<compile_context>
chip_gen: v5e
topology: v5e:2x2
jax: 0.10.0
libtpu: 0.0.40
codegen_flags: <defaults>
</compile_context>

<pallas_src>
import jax
import jax.numpy as jnp
from jax.experimental import pallas as pl
from jax.experimental.pallas import tpu as pltpu

LANE = 128  # TPU vreg lane width


def _round_up(x, m):
    return (x + m - 1) // m * m


def mlp_kernel(x_ref, w1_ref, b1_ref, w2_ref, b2_ref, w3_ref, b3_ref, o_ref):
    # One grid step = TILE_M rows of the batch; all feature dims are 128-padded.
    x = x_ref[...]

    # linear1 + relu (f32 accumulation on the MXU)
    z1 = jnp.dot(x, w1_ref[...], preferred_element_type=jnp.float32) + b1_ref[...]
    s1 = jnp.maximum(z1, 0.0)

    # linear2 + sigmoid (sigmoid -> EUP transcendental slot)
    z2 = jnp.dot(s1.astype(w2_ref.dtype), w2_ref[...],
                 preferred_element_type=jnp.float32) + b2_ref[...]
    s2 = jax.nn.sigmoid(z2)

    # output linear
    z3 = jnp.dot(s2.astype(w3_ref.dtype), w3_ref[...],
                 preferred_element_type=jnp.float32) + b3_ref[...]
    o_ref[...] = z3.astype(o_ref.dtype)


def mlp_forward(x, w1, b1, w2, b2, w3, b3, *,
                compute_dtype=jnp.float32, tile_m=256):
    """Fused MLP forward.  Returns (batch, out_features) float32.

    compute_dtype: set to jnp.bfloat16 on v6e/v7x for 2x MXU throughput and
    half the weight/activation DMA bytes (accumulation stays f32)."""
    batch, in_f = x.shape
    h1 = w1.shape[1]
    h2 = w2.shape[1]
    out_f = w3.shape[1]

    # Lane-dense (128-padded) feature dims; zero padding keeps results exact
    # (padded hidden lanes stay 0 through relu, and sigmoid(0)=0.5 only ever
    #  multiplies zero-padded rows of w3).
    in_p = _round_up(in_f, LANE)
    h1_p = _round_up(h1, LANE)
    h2_p = _round_up(h2, LANE)
    out_p = _round_up(out_f, LANE)

    # Batch tiling: big tiles for large batches, minimal (multiple-of-8) tile
    # for small ones.  Padded rows are zeros and are sliced off afterwards.
    tm = tile_m if batch >= tile_m else _round_up(batch, 8)
    m_p = _round_up(batch, tm)
    grid_m = m_p // tm

    def pad2(a, rows, cols):
        return jnp.pad(a, ((0, rows - a.shape[0]), (0, cols - a.shape[1])))

    xp = pad2(x, m_p, in_p).astype(compute_dtype)
    w1p = pad2(w1, in_p, h1_p).astype(compute_dtype)
    w2p = pad2(w2, h1_p, h2_p).astype(compute_dtype)
    w3p = pad2(w3, h2_p, out_p).astype(compute_dtype)
    b1p = pad2(b1.reshape(1, -1), 1, h1_p).astype(jnp.float32)
    b2p = pad2(b2.reshape(1, -1), 1, h2_p).astype(jnp.float32)
    b3p = pad2(b3.reshape(1, -1), 1, out_p).astype(jnp.float32)

    x_spec = pl.BlockSpec((tm, in_p), lambda i: (i, 0))
    o_spec = pl.BlockSpec((tm, out_p), lambda i: (i, 0))

    def resident(shape):
        # Constant block index across the grid => stays resident in VMEM.
        return pl.BlockSpec(shape, lambda i: (0, 0))

    out_padded = pl.pallas_call(
        mlp_kernel,
        out_shape=jax.ShapeDtypeStruct((m_p, out_p), jnp.float32),
        grid=(grid_m,),
        in_specs=[
            x_spec,
            resident((in_p, h1_p)), resident((1, h1_p)),
            resident((h1_p, h2_p)), resident((1, h2_p)),
            resident((h2_p, out_p)), resident((1, out_p)),
        ],
        out_specs=o_spec,
        compiler_params=pltpu.CompilerParams(
            dimension_semantics=("parallel",)),  # shards batch tiles across v7x's 2 TCs
    )(xp, w1p, b1p, w2p, b2p, w3p, b3p)

    return out_padded[:batch, :out_f]


def init_params(key, in_features=10, out_features=3):
    """Deterministic init matching the PyTorch module's shapes.
    PyTorch nn.Linear(in, out) stores weight as (out, in); we keep (in, out)
    so the kernel computes x @ W + b."""
    dims = [(in_features, 13), (13, 8), (8, out_features)]
    params = []
    for fin, fout in dims:
        kw, kb, key = jax.random.split(key, 3)
        bound = 1.0 / (fin ** 0.5)  # same scale as PyTorch's default uniform init
        w = jax.random.uniform(kw, (fin, fout), jnp.float32, -bound, bound)
        b = jax.random.uniform(kb, (fout,), jnp.float32, -bound, bound)
        params += [w, b]
    return params


if __name__ == "__main__":
    key = jax.random.PRNGKey(0)
    kx, kp = jax.random.split(key)

    batch, in_features, out_features = 8, 10, 3
    x = jax.random.normal(kx, (batch, in_features), dtype=jnp.float32)
    w1, b1, w2, b2, w3, b3 = init_params(kp, in_features, out_features)

    out = mlp_forward(x, w1, b1, w2, b2, w3, b3)
    jax.block_until_ready(out)

    # Reference in plain JAX (same math).
    ref = jnp.maximum(x @ w1 + b1, 0.0)
    ref = jax.nn.sigmoid(ref @ w2 + b2)
    ref = ref @ w3 + b3

    assert out.shape == (batch, out_features)
    assert jnp.allclose(out, ref, atol=1e-5), "mismatch vs reference"

    print("KERNEL_OK")
</pallas_src>

<mosaic_0001>
module attributes {stable_mosaic.version = 11 : i64} {
  func.func @mlp_kernel(%arg0: i32, %arg1: memref<8x128xf32, #tpu.memory_space<vmem>>, %arg2: memref<128x128xf32, #tpu.memory_space<vmem>>, %arg3: memref<1x128xf32, #tpu.memory_space<vmem>>, %arg4: memref<128x128xf32, #tpu.memory_space<vmem>>, %arg5: memref<1x128xf32, #tpu.memory_space<vmem>>, %arg6: memref<128x128xf32, #tpu.memory_space<vmem>>, %arg7: memref<1x128xf32, #tpu.memory_space<vmem>>, %arg8: memref<8x128xf32, #tpu.memory_space<vmem>>) attributes {dimension_semantics = [#tpu.dimension_semantics<parallel>], iteration_bounds = array<i64: 1>, scalar_prefetch = 0 : i64, scratch_operands = 0 : i64, tpu.core_type = #tpu.core_type<tc>, window_params = [{transform_indices = @transform_0, window_bounds = array<i64: 8, 128>}, {pipeline_mode = #tpu.pipeline_mode<synchronous>, transform_indices = @transform_1, window_bounds = array<i64: 128, 128>}, {pipeline_mode = #tpu.pipeline_mode<synchronous>, transform_indices = @transform_2, window_bounds = array<i64: 1, 128>}, {pipeline_mode = #tpu.pipeline_mode<synchronous>, transform_indices = @transform_3, window_bounds = array<i64: 128, 128>}, {pipeline_mode = #tpu.pipeline_mode<synchronous>, transform_indices = @transform_4, window_bounds = array<i64: 1, 128>}, {pipeline_mode = #tpu.pipeline_mode<synchronous>, transform_indices = @transform_5, window_bounds = array<i64: 128, 128>}, {pipeline_mode = #tpu.pipeline_mode<synchronous>, transform_indices = @transform_6, window_bounds = array<i64: 1, 128>}, {transform_indices = @transform_7, window_bounds = array<i64: 8, 128>}]} {
    %c0 = arith.constant 0 : index
    %c0_0 = arith.constant 0 : index
    %0 = vector.load %arg1[%c0, %c0_0] : memref<8x128xf32, #tpu.memory_space<vmem>>, vector<8x128xf32>
    %c0_1 = arith.constant 0 : index
    %c0_2 = arith.constant 0 : index
    %1 = vector.load %arg2[%c0_1, %c0_2] : memref<128x128xf32, #tpu.memory_space<vmem>>, vector<128x128xf32>
    %cst = arith.constant dense<0.000000e+00> : vector<8x128xf32>
    %2 = tpu.matmul %0, %1, %cst {dimension_numbers = #tpu.dot_dimension_numbers<[1], [0], [0], [1], [0, 0, 1, 1], [], []>} : vector<8x128xf32>, vector<128x128xf32>, vector<8x128xf32> -> vector<8x128xf32>
    %c0_3 = arith.constant 0 : index
    %c0_4 = arith.constant 0 : index
    %3 = vector.load %arg3[%c0_3, %c0_4] : memref<1x128xf32, #tpu.memory_space<vmem>>, vector<1x128xf32>
    %4 = vector.broadcast %3 : vector<1x128xf32> to vector<8x128xf32>
    %5 = arith.addf %2, %4 : vector<8x128xf32>
    %cst_5 = arith.constant 0.000000e+00 : f32
    %6 = vector.broadcast %cst_5 : f32 to vector<8x128xf32>
    %7 = arith.maximumf %5, %6 : vector<8x128xf32>
    %c0_6 = arith.constant 0 : index
    %c0_7 = arith.constant 0 : index
    %8 = vector.load %arg4[%c0_6, %c0_7] : memref<128x128xf32, #tpu.memory_space<vmem>>, vector<128x128xf32>
    %cst_8 = arith.constant dense<0.000000e+00> : vector<8x128xf32>
    %9 = tpu.matmul %7, %8, %cst_8 {dimension_numbers = #tpu.dot_dimension_numbers<[1], [0], [0], [1], [0, 0, 1, 1], [], []>} : vector<8x128xf32>, vector<128x128xf32>, vector<8x128xf32> -> vector<8x128xf32>
    %c0_9 = arith.constant 0 : index
    %c0_10 = arith.constant 0 : index
    %10 = vector.load %arg5[%c0_9, %c0_10] : memref<1x128xf32, #tpu.memory_space<vmem>>, vector<1x128xf32>
    %11 = vector.broadcast %10 : vector<1x128xf32> to vector<8x128xf32>
    %12 = arith.addf %9, %11 : vector<8x128xf32>
    %13 = arith.negf %12 : vector<8x128xf32>
    %14 = math.exp %13 : vector<8x128xf32>
    %cst_11 = arith.constant 1.000000e+00 : f32
    %15 = vector.broadcast %cst_11 : f32 to vector<8x128xf32>
    %16 = arith.addf %15, %14 : vector<8x128xf32>
    %17 = arith.divf %15, %16 : vector<8x128xf32>
    %c0_12 = arith.constant 0 : index
    %c0_13 = arith.constant 0 : index
    %18 = vector.load %arg6[%c0_12, %c0_13] : memref<128x128xf32, #tpu.memory_space<vmem>>, vector<128x128xf32>
    %cst_14 = arith.constant dense<0.000000e+00> : vector<8x128xf32>
    %19 = tpu.matmul %17, %18, %cst_14 {dimension_numbers = #tpu.dot_dimension_numbers<[1], [0], [0], [1], [0, 0, 1, 1], [], []>} : vector<8x128xf32>, vector<128x128xf32>, vector<8x128xf32> -> vector<8x128xf32>
    %c0_15 = arith.constant 0 : index
    %c0_16 = arith.constant 0 : index
    %20 = vector.load %arg7[%c0_15, %c0_16] : memref<1x128xf32, #tpu.memory_space<vmem>>, vector<1x128xf32>
    %21 = vector.broadcast %20 : vector<1x128xf32> to vector<8x128xf32>
    %22 = arith.addf %19, %21 : vector<8x128xf32>
    %c0_17 = arith.constant 0 : index
    %c0_18 = arith.constant 0 : index
    %23 = vector.load %arg8[%c0_17, %c0_18] : memref<8x128xf32, #tpu.memory_space<vmem>>, vector<8x128xf32>
    tpu.vector_store %arg8[%c0_17, %c0_18], %22 {strides = array<i32>} : memref<8x128xf32, #tpu.memory_space<vmem>>, vector<8x128xf32>,
    return
  }
  func.func @transform_0(%arg0: i32) -> (i32, i32) {
    %c0_i32 = arith.constant 0 : i32
    %c0_i32_0 = arith.constant 0 : i32
    return %arg0, %c0_i32 : i32, i32
  }
  func.func @transform_1(%arg0: i32) -> (i32, i32) {
    %c0_i32 = arith.constant 0 : i32
    %c0_i32_0 = arith.constant 0 : i32
    %c0_i32_1 = arith.constant 0 : i32
    return %c0_i32, %c0_i32_0 : i32, i32
  }
  func.func @transform_2(%arg0: i32) -> (i32, i32) {
    %c0_i32 = arith.constant 0 : i32
    %c0_i32_0 = arith.constant 0 : i32
    %c0_i32_1 = arith.constant 0 : i32
    return %c0_i32, %c0_i32_0 : i32, i32
  }
  func.func @transform_3(%arg0: i32) -> (i32, i32) {
    %c0_i32 = arith.constant 0 : i32
    %c0_i32_0 = arith.constant 0 : i32
    %c0_i32_1 = arith.constant 0 : i32
    return %c0_i32, %c0_i32_0 : i32, i32
  }
  func.func @transform_4(%arg0: i32) -> (i32, i32) {
    %c0_i32 = arith.constant 0 : i32
    %c0_i32_0 = arith.constant 0 : i32
    %c0_i32_1 = arith.constant 0 : i32
    return %c0_i32, %c0_i32_0 : i32, i32
  }
  func.func @transform_5(%arg0: i32) -> (i32, i32) {
    %c0_i32 = arith.constant 0 : i32
    %c0_i32_0 = arith.constant 0 : i32
    %c0_i32_1 = arith.constant 0 : i32
    return %c0_i32, %c0_i32_0 : i32, i32
  }
  func.func @transform_6(%arg0: i32) -> (i32, i32) {
    %c0_i32 = arith.constant 0 : i32
    %c0_i32_0 = arith.constant 0 : i32
    %c0_i32_1 = arith.constant 0 : i32
    return %c0_i32, %c0_i32_0 : i32, i32
  }
  func.func @transform_7(%arg0: i32) -> (i32, i32) {
    %c0_i32 = arith.constant 0 : i32
    %c0_i32_0 = arith.constant 0 : i32
    return %arg0, %c0_i32 : i32, i32
  }
}

</mosaic_0001>

<bundles_post_ra>
// kernel: tpu_custom_call.1
= control target key start
LH: loop header
LB: loop body
LE: loop exit
PB: predicated region body
PF: predicated region fallthrough
CT: control target
= control target key end

     0   :  { %12 = vsyncpa [#allocation3], 0  ;;  %s463_s0 = inlined_call_operand.hbm [shape: f32[8,128], index: 0, kind: input, shape index: {}]   ;;  %s464_s1 = inlined_call_operand.hbm [shape: f32[128,128], index: 1, kind: input, shape index: {}]   ;;  %s465_s2 = inlined_call_operand.vmem [shape: f32[1,128], index: 2, kind: input, shape index: {}]   ;;  %s466_s3 = inlined_call_operand.hbm [shape: f32[128,128], index: 3, kind: input, shape index: {}]   ;;  %s467_s4 = inlined_call_operand.vmem [shape: f32[1,128], index: 4, kind: input, shape index: {}]   ;;  %s468_s5 = inlined_call_operand.hbm [shape: f32[128,128], index: 5, kind: input, shape index: {}]   ;;  %s469_s6 = inlined_call_operand.vmem [shape: f32[1,128], index: 6, kind: input, shape index: {}]   ;;  %s470_s7 = inlined_call_operand.hbm [shape: f32[8,128], index: 7, kind: output, shape index: {}]  }
   0x1   :  { %13 = vsyncpa [#allocation6], 0 }
   0x2   :  { %14 = vsyncpa [#allocation9], 0  ;;  %s31_s26 = sshll.u32 %s464_s1, 4  ;;  %s32_s26 = int_to_ptr.hbm [resolvable:$true] %s31_s26 }
   0x3   :  { %15 = vsyncpa [#allocation4], 0  ;;  %s392_s27 = smov [#allocation5]   ;;  %s21_s8 = sshll.u32 %s463_s0, 4  ;;  %s22_s8 = int_to_ptr.hbm [resolvable:$true] %s21_s8 }
   0x4   :  { %s33_s28 = sshll.u32 %s392_s27, 4  ;;  %s393_s9 = smov 128   ;;  %s34_s28 = int_to_ptr.vmem [resolvable:$true] %s33_s28 }
   0x5   :  { %s394_s10 = smov 8   ;;  %s395_s11 = smov [#allocation2]  }
   0x6   :  { %39 = dma.hbm_to_vmem [thread:$0]  %s32_s26, 2048, %s34_s28, [#allocation6], %s393_s9, %s393_s9, %s394_s10  }
   0x7   :  { %s23_s12 = sshll.u32 %s395_s11, 4  ;;  %s46_s15 = sshll.u32 %s466_s3, 4  ;;  %s24_s12 = int_to_ptr.vmem [resolvable:$true] %s23_s12  ;;  %s47_s15 = int_to_ptr.hbm [resolvable:$true] %s46_s15 }
   0x8   :  { %26 = dma.hbm_to_vmem [thread:$0]  %s22_s8, 128, %s24_s12, [#allocation3]  }
   0x9   :  { %s61_s17 = sshll.u32 %s468_s5, 4  ;;  %s396_s18 = smov [#allocation7]   ;;  %s62_s17 = int_to_ptr.hbm [resolvable:$true] %s61_s17 }
   0xa   :  { %s48_s19 = sshll.u32 %s396_s18, 4  ;;  %s397_s0 = smov [#allocation8]   ;;  %s49_s19 = int_to_ptr.vmem [resolvable:$true] %s48_s19 }
   0xb   :  { %54 = dma.hbm_to_vmem [thread:$0]  %s47_s15, 2048, %s49_s19, [#allocation6], %s393_s9, %s393_s9, %s394_s10  }
   0xc   :  { %s63_s20 = sshll.u32 %s397_s0, 4  ;;  %s64_s20 = int_to_ptr.vmem [resolvable:$true] %s63_s20 }
   0xd   :  { %69 = dma.hbm_to_vmem [thread:$0]  %s62_s17, 2048, %s64_s20, [#allocation9], %s393_s9, %s393_s9, %s394_s10  }
   0xe   :  { %384 = dma.done.wait [#allocation3], 128  }
   0xf   :  { %385 = vsyncadd [#allocation3], 4294967168 }
  0x10   :  { %386 = dma.done.wait [#allocation6], 4096  }
  0x11   :  { %387 = vsyncadd [#allocation6], 4294963200 }
  0x12   :  { %388 = dma.done.wait [#allocation9], 2048  }
  0x13   :  { %389 = vsyncadd [#allocation9], 4294965248  ;;  %v104_v0 = vld [vmem:[#allocation5 + $0x78] sm:$0xff]  ;;  %v103_v1 = vld [vmem:[#allocation5 + $0x70] sm:$0xff]  ;;  %s398_s23 = smov [#allocation10]   ;;  %s237_s27 = sshll.u32 %s470_s7, 4  ;;  %s238_s27 = int_to_ptr.hbm [resolvable:$true] %s237_s27 }
  0x14   :  { %109 = vmatpush.msra.mxu0 %v104_v0  ;;  %v102_v2 = vld [vmem:[#allocation5 + $0x68] sm:$0xff]  ;;  %v101_v3 = vld [vmem:[#allocation5 + $0x60] sm:$0xff]  ;;  %v145_v4 = vld [vmem:[#allocation7 + $0x78] sm:$0xff]  ;;  %s235_s24 = sshll.u32 %s398_s23, 4  ;;  %s236_s24 = int_to_ptr.vmem [resolvable:$true] %s235_s24 }
  0x15   :  { %v100_v5 = vld [vmem:[#allocation5 + $0x58] sm:$0xff]  ;;  %150 = vmatpush.msra.mxu1 %v145_v4  ;;  %v144_v6 = vld [vmem:[#allocation7 + $0x70] sm:$0xff]  ;;  %v143_v7 = vld [vmem:[#allocation7 + $0x68] sm:$0xff] }
  0x16   :  { %110 = vmatpush.msra.mxu0 %v103_v1  ;;  %v99_v8 = vld [vmem:[#allocation5 + $0x50] sm:$0xff]  ;;  %v142_v9 = vld [vmem:[#allocation7 + $0x60] sm:$0xff]  ;;  %v98_v10 = vld [vmem:[#allocation5 + $0x48] sm:$0xff] }
  0x17   :  { %151 = vmatpush.msra.mxu1 %v144_v6  ;;  %v141_v11 = vld [vmem:[#allocation7 + $0x58] sm:$0xff]  ;;  %v97_v12 = vld [vmem:[#allocation5 + $0x40] sm:$0xff]  ;;  %v140_v13 = vld [vmem:[#allocation7 + $0x50] sm:$0xff] }
  0x18   :  { %111 = vmatpush.msra.mxu0 %v102_v2  ;;  %v96_v14 = vld [vmem:[#allocation5 + $0x38] sm:$0xff]  ;;  %v139_v15 = vld [vmem:[#allocation7 + $0x48] sm:$0xff]  ;;  %v95_v16 = vld [vmem:[#allocation5 + $0x30] sm:$0xff] }
  0x19   :  { %152 = vmatpush.msra.mxu1 %v143_v7  ;;  %v138_v17 = vld [vmem:[#allocation7 + $0x40] sm:$0xff]  ;;  %v94_v18 = vld [vmem:[#allocation5 + $0x28] sm:$0xff]  ;;  %v137_v19 = vld [vmem:[#allocation7 + $0x38] sm:$0xff] }
  0x1a   :  { %112 = vmatpush.msra.mxu0 %v101_v3  ;;  %v93_v20 = vld [vmem:[#allocation5 + $0x20] sm:$0xff]  ;;  %v136_v21 = vld [vmem:[#allocation7 + $0x30] sm:$0xff]  ;;  %v92_v22 = vld [vmem:[#allocation5 + $0x18] sm:$0xff] }
  0x1b   :  { %153 = vmatpush.msra.mxu1 %v142_v9  ;;  %v135_v23 = vld [vmem:[#allocation7 + $0x28] sm:$0xff]  ;;  %v91_v24 = vld [vmem:[#allocation5 + $0x10] sm:$0xff]  ;;  %v134_v25 = vld [vmem:[#allocation7 + $0x20] sm:$0xff] }
  0x1c   :  { %113 = vmatpush.msra.mxu0 %v100_v5  ;;  %v90_v26 = vld [vmem:[#allocation5 + $0x8] sm:$0xff]  ;;  %v133_v27 = vld [vmem:[#allocation7 + $0x18] sm:$0xff]  ;;  %v89_v28 = vld [vmem:[#allocation5] sm:$0xff] }
  0x1d   :  { %154 = vmatpush.msra.mxu1 %v141_v11  ;;  %v88_v29 = vld [vmem:[#allocation2] sm:$0xff]  ;;  %v132_v30 = vld [vmem:[#allocation7 + $0x10] sm:$0xff]  ;;  %v131_v31 = vld [vmem:[#allocation7 + $0x8] sm:$0xff] }
  0x1e   :  { %114 = vmatpush.msra.mxu0 %v99_v8  ;;  %v130_v32 = vld [vmem:[#allocation7] sm:$0xff]  ;;  %v257_v33 = vld [vmem:[%s465_s2] ss:$0 sm:$0xff]  ;;  %v203_v38 = vld [vmem:[#allocation8 + $0x70] sm:$0xff] }
  0x1f   :  { %155 = vmatpush.msra.mxu1 %v140_v13  ;;  %v204_v37 = vld [vmem:[#allocation8 + $0x78] sm:$0xff]  ;;  %v202_v39 = vld [vmem:[#allocation8 + $0x68] sm:$0xff]  ;;  %v201_v40 = vld [vmem:[#allocation8 + $0x60] sm:$0xff] }
  0x20   :  { %115 = vmatpush.msra.mxu0 %v98_v10  ;;  %209 = vmatpush.msra.mxu2 %v204_v37  ;;  %v200_v41 = vld [vmem:[#allocation8 + $0x58] sm:$0xff]  ;;  %v199_v42 = vld [vmem:[#allocation8 + $0x50] sm:$0xff]  ;;  %v198_v43 = vld [vmem:[#allocation8 + $0x48] sm:$0xff] }
  0x21   :  { %156 = vmatpush.msra.mxu1 %v139_v15  ;;  %v197_v44 = vld [vmem:[#allocation8 + $0x40] sm:$0xff]  ;;  %v196_v45 = vld [vmem:[#allocation8 + $0x38] sm:$0xff]  ;;  %v195_v46 = vld [vmem:[#allocation8 + $0x30] sm:$0xff] }
  0x22   :  { %116 = vmatpush.msra.mxu0 %v97_v12  ;;  %210 = vmatpush.msra.mxu2 %v203_v38  ;;  %v194_v47 = vld [vmem:[#allocation8 + $0x28] sm:$0xff]  ;;  %v193_v48 = vld [vmem:[#allocation8 + $0x20] sm:$0xff]  ;;  %v192_v49 = vld [vmem:[#allocation8 + $0x18] sm:$0xff] }
  0x23   :  { %157 = vmatpush.msra.mxu1 %v138_v17  ;;  %v191_v50 = vld [vmem:[#allocation8 + $0x10] sm:$0xff]  ;;  %v190_v51 = vld [vmem:[#allocation8 + $0x8] sm:$0xff]  ;;  %v189_v52 = vld [vmem:[#allocation8] sm:$0xff] }
  0x24   :  { %117 = vmatpush.msra.mxu0 %v96_v14  ;;  %211 = vmatpush.msra.mxu2 %v202_v39  ;;  %v258_v53 = vld [vmem:[%s467_s4] ss:$0 sm:$0xff] }
  0x25   :  { %158 = vmatpush.msra.mxu1 %v137_v19  ;;  %v259_v5 = vld [vmem:[%s469_s6] ss:$0 sm:$0xff] }
  0x26   :  { %118 = vmatpush.msra.mxu0 %v95_v16  ;;  %212 = vmatpush.msra.mxu2 %v201_v40 }
  0x27   :  { %159 = vmatpush.msra.mxu1 %v136_v21 }
  0x28   :  { %119 = vmatpush.msra.mxu0 %v94_v18  ;;  %213 = vmatpush.msra.mxu2 %v200_v41 }
  0x29   :  { %160 = vmatpush.msra.mxu1 %v135_v23 }
  0x2a   :  { %120 = vmatpush.msra.mxu0 %v93_v20  ;;  %214 = vmatpush.msra.mxu2 %v199_v42 }
  0x2b   :  { %161 = vmatpush.msra.mxu1 %v134_v25 }
  0x2c   :  { %121 = vmatpush.msra.mxu0 %v92_v22  ;;  %215 = vmatpush.msra.mxu2 %v198_v43 }
  0x2d   :  { %162 = vmatpush.msra.mxu1 %v133_v27 }
  0x2e   :  { %122 = vmatpush.msra.mxu0 %v91_v24  ;;  %216 = vmatpush.msra.mxu2 %v197_v44 }
  0x2f   :  { %163 = vmatpush.msra.mxu1 %v132_v30 }
  0x30   :  { %123 = vmatpush.msra.mxu0 %v90_v26  ;;  %217 = vmatpush.msra.mxu2 %v196_v45 }
  0x31   :  { %164 = vmatpush.msra.mxu1 %v131_v31 }
  0x32   :  { %124 = vmatpush.msra.mxu0 %v89_v28  ;;  %218 = vmatpush.msra.mxu2 %v195_v46 }
  0x33   :  { %125 = vmatmul.f32.vlgmr.msra.gmra.mxu0 %v88_v29  ;;  %165 = vmatpush.msra.mxu1 %v130_v32 }
  0x34   :  { %219 = vmatpush.msra.mxu2 %v194_v47 }
  0x36   :  { %220 = vmatpush.msra.mxu2 %v193_v48 }
  0x38   :  { %221 = vmatpush.msra.mxu2 %v192_v49 }
  0x3a   :  { %222 = vmatpush.msra.mxu2 %v191_v50 }
  0x3c   :  { %223 = vmatpush.msra.mxu2 %v190_v51 }
  0x3e   :  { %224 = vmatpush.msra.mxu2 %v189_v52 }
  0xb0   :  { %v126_v34 = vpop.f32.mrf.mxu0 }
  0xb1   :  { %v127_v35 = vadd.f32 %v257_v33, %v126_v34 }
  0xb3   :  { %v129_v36 = vmax.f32 %v127_v35, 0.0 }
  0xb5   :  { %166 = vmatmul.f32.vlgmr.msra.gmra.mxu1 %v129_v36 }
 0x132   :  { %v167_v54 = vpop.f32.mrf.mxu1 }
 0x133   :  { %v168_v55 = vadd.f32 %v258_v53, %v167_v54 }
 0x135   :  { %v249_v56 = vmul.f32 -1.442695, %v168_v55 }
 0x137   :  { %260 = vpow2.f32 %v249_v56 }
 0x13d   :  { %v261_v57 = vpop.eup %260 }
 0x13e   :  { %v173_v58 = vadd.f32 1.0, %v261_v57 }
 0x140   :  { %262 = vrcp.f32 %v173_v58  ;;  %v185_v62 = vand.u32 2147483648, %v173_v58  ;;  %v183_v0 = vand.u32 2147483647, %v173_v58  ;;  %vm179_vm1 = vweird.f32 %v173_v58 }
 0x142   :  { %v186_v2 = vor.u32 1.1754944e-38, %v185_v62  ;;  %vm184_vm3 = vcmp.eq.f32.partialorder %v183_v0, 8.507059e+37 }
 0x146   :  { %v263_v59 = vpop.eup %262 }
 0x147   :  { %v175_v60 = vmul.f32 %v263_v59, %v173_v58  ;;  %vm180_vm0 = vweird.f32 %v263_v59 }
 0x148   :  { %vm181_vm2 = vmor %vm179_vm1, %vm180_vm0 }
 0x149   :  { %v176_v61 = vsub.f32 1.0, %v175_v60 }
 0x14b   :  { %v177_v63 = vmul.f32 %v263_v59, %v176_v61 }
 0x14d   :  { %v178_v1 = vadd.f32 %v263_v59, %v177_v63 }
 0x14f   :  { %v182_v3 = vsel %vm181_vm2, %v263_v59, %v178_v1 }
 0x150   :  { %v187_v4 = vsel %vm184_vm3, %v186_v2, %v182_v3 }
 0x151   :  { %225 = vmatmul.f32.vlgmr.msra.gmra.mxu2 %v187_v4 }
 0x1d4   :  { %v226_v6 = vpop.f32.mrf.mxu2 }
 0x1d5   :  { %v227_v7 = vadd.f32 %v259_v5, %v226_v6 }
 0x1d7   :  { %229 = vst [vmem:[#allocation10] sm:$0xff] %v227_v7 }
 0x1d8   :  { %240 = dma.vmem_to_hbm [thread:$0]  %s236_s24, 128, %s238_s27, [#allocation4]  }
 0x1d9   :  { %390 = dma.done.wait [#allocation4], 128  }
 0x1da   :  { %391 = vsyncadd [#allocation4], 4294967168 }
 0x1db   :  { %245 = vsyncpa [#allocation3], 1 }
 0x1dc   :  { %246 = vsyncpa [#allocation6], 1 }
 0x1dd   :  { %247 = vsyncpa [#allocation9], 1 }
 0x1de   :  { %248 = vsyncpa [#allocation4], 1 }

</bundles_post_ra>
